<compile_context>
chip_gen: v5e
topology: v5e:2x2
jax: 0.10.0
libtpu: 0.0.40
codegen_flags: <defaults>
</compile_context>

<pallas_src>
import functools

import numpy as np
import jax
import jax.numpy as jnp
from jax.experimental import pallas as pl
from jax.experimental.pallas import tpu as pltpu


def _round_up(x, m):
    return (x + m - 1) // m * m


# ---------------------------------------------------------------------------
# Pallas kernel: 9 accumulating pool+conv matmuls -> instance-norm -> leaky-relu
# ---------------------------------------------------------------------------
def _down_block_kernel(x_ref, w_ref, mask_ref, o_ref, *, wp2, npix):
    # x_ref:    (bt, 4Cin, Lp)   bf16  flattened, zero-padded, space-to-depth input
    # w_ref:    (9, Cout, 4Cin)  bf16  conv taps, 0.25 avg-pool factor folded in
    # mask_ref: (1, 1, Lv)       f32   1.0 at valid output lanes, 0.0 at garbage columns
    # o_ref:    (bt, Cout, Lv)   f32   normalized + activated output (lane-dense store)
    bt = x_ref.shape[0]
    lv = o_ref.shape[2]

    mask = mask_ref[0]                      # (1, Lv) f32
    inv_n = 1.0 / float(npix)

    for b in range(bt):                     # static unroll over the batch tile
        # Fused avg-pool + 3x3 conv: nine accumulating bf16 MXU matmuls (f32 acc).
        acc = jnp.zeros(o_ref.shape[1:], jnp.float32)           # (Cout, Lv)
        for dy in range(3):
            for dx in range(3):
                start = dy * wp2 + dx                           # static lane offset
                tap = x_ref[b, :, start:start + lv]             # (4Cin, Lv) bf16
                acc = acc + jnp.dot(w_ref[dy * 3 + dx], tap,
                                    preferred_element_type=jnp.float32)

        # InstanceNorm2d(affine=False, eps=1e-5, biased variance) over valid lanes only.
        mean = jnp.sum(acc * mask, axis=-1, keepdims=True) * inv_n
        cent = acc - mean
        var = jnp.sum(cent * cent * mask, axis=-1, keepdims=True) * inv_n
        y = cent * jax.lax.rsqrt(var + 1e-5)

        # LeakyReLU(0.2); garbage lanes carry junk values and are sliced off outside.
        o_ref[b] = jnp.where(y >= 0.0, y, 0.2 * y).astype(o_ref.dtype)


# ---------------------------------------------------------------------------
# Batch-tile picker: VMEM-byte budget, keep >=2 grid steps (v7x megacore), cap unroll
# ---------------------------------------------------------------------------
def _pick_block_batch(B, per_img_bytes, hpwp):
    budget = 6 << 20          # conservative vs. 16 MiB (v5e) / 32 MiB (v6e, v7x) scoped VMEM
    best = 1
    for d in range(1, B + 1):
        if B % d != 0:
            continue
        if d > 1 and B // d < 2:          # keep >=2 grid steps for the 2 v7x TensorCores
            continue
        if d * per_img_bytes > budget:
            continue
        if d * hpwp > 4096 or d > 16:     # enough to amortize ~0.35us/step, bounded unroll
            continue
        best = d
    return best


# ---------------------------------------------------------------------------
# Wrapper: layout plumbing (space-to-depth, pad, flatten, bf16) + pallas_call
# ---------------------------------------------------------------------------
def full_down_block(x_nchw, weight, bias=None, *, block_batch=None):
    """x_nchw: (B, Cin, H, W); weight: (Cout, Cin, 3, 3); bias: (Cout,) (unused: it is
    exactly cancelled by the following InstanceNorm, as in PyTorch).
    Returns (B, Cout, H//2, W//2) float32."""
    del bias  # cancelled by InstanceNorm2d(affine=False)
    B, Cin, H, W = x_nchw.shape
    Cout = weight.shape[0]
    assert H % 2 == 0 and W % 2 == 0, "AvgPool2d(2,2) needs even H, W"
    Hp, Wp = H // 2, W // 2
    Wp2 = Wp + 2                              # padded pooled width
    C4 = 4 * Cin                              # 2x2 pool window folded into channels
    Lv = Hp * Wp2                             # output lanes (incl. 2 garbage cols per row)
    Lp_raw = (Hp + 2) * Wp2                   # flattened padded plane
    Lp = _round_up(Lp_raw + 2, 128)           # +2 slack so every tap slice stays in bounds

    # Space-to-depth (channel index = (a*2+c)*Cin + ch), conv pad in pooled coords,
    # flatten spatial onto lanes, cast to bf16 (MXU consumes bf16 anyway).
    xs = x_nchw.reshape(B, Cin, Hp, 2, Wp, 2)
    xs = jnp.transpose(xs, (0, 3, 5, 1, 2, 4)).reshape(B, C4, Hp, Wp)
    xs = jnp.pad(xs, ((0, 0), (0, 0), (1, 1), (1, 1)))
    xs = xs.reshape(B, C4, Lp_raw)
    xs = jnp.pad(xs, ((0, 0), (0, 0), (0, Lp - Lp_raw))).astype(jnp.bfloat16)

    # Conv weights, tap-major and transposed (Cout, 4Cin), 0.25 avg-pool folded in.
    wt = jnp.transpose(weight, (2, 3, 0, 1)).reshape(9, Cout, 1, Cin)
    w_eff = (0.25 * jnp.broadcast_to(wt, (9, Cout, 4, Cin))).reshape(9, Cout, C4)
    w_eff = w_eff.astype(jnp.bfloat16)

    # Validity mask over the Lv output lanes (zero at the 2 garbage columns per row).
    col = jnp.arange(Lv, dtype=jnp.int32) % Wp2
    mask = (col < Wp).astype(jnp.float32).reshape(1, 1, Lv)

    # Per-image, per-step VMEM estimate (double-buffered in/out + f32 acc + tap temps).
    per_img = 2 * C4 * Lp * 2 + 3 * Cout * Lv * 4 + 2 * C4 * Lv * 2
    if block_batch is None:
        bt = _pick_block_batch(B, per_img, Hp * Wp)
    else:
        bt = block_batch
        assert B % bt == 0
    grid = (B // bt,)

    kernel = functools.partial(_down_block_kernel, wp2=Wp2, npix=Hp * Wp)
    out = pl.pallas_call(
        kernel,
        out_shape=jax.ShapeDtypeStruct((B, Cout, Lv), jnp.float32),
        grid=grid,
        in_specs=[
            pl.BlockSpec((bt, C4, Lp), lambda b: (b, 0, 0)),
            pl.BlockSpec((9, Cout, C4), lambda b: (0, 0, 0)),    # grid-invariant weights
            pl.BlockSpec((1, 1, Lv), lambda b: (0, 0, 0)),       # grid-invariant mask
        ],
        out_specs=pl.BlockSpec((bt, Cout, Lv), lambda b: (b, 0, 0)),
        compiler_params=pltpu.CompilerParams(dimension_semantics=("parallel",)),
    )(xs, w_eff, mask)

    # Drop the 2 garbage columns per row; result is already NCHW.
    return out.reshape(B, Cout, Hp, Wp2)[:, :, :, :Wp]


# ---------------------------------------------------------------------------
# Pure-JAX f32 reference (mirrors PyTorch semantics) for the correctness check
# ---------------------------------------------------------------------------
def ref_forward(x_nchw, weight, bias):
    B, Cin, H, W = x_nchw.shape
    pooled = x_nchw.reshape(B, Cin, H // 2, 2, W // 2, 2).mean(axis=(3, 5))
    conv = jax.lax.conv_general_dilated(
        pooled, weight, window_strides=(1, 1), padding=[(1, 1), (1, 1)],
        dimension_numbers=("NCHW", "OIHW", "NCHW"))
    conv = conv + bias[None, :, None, None]
    mean = conv.mean(axis=(2, 3), keepdims=True)
    var = jnp.var(conv, axis=(2, 3), keepdims=True)   # biased, like InstanceNorm2d
    y = (conv - mean) / jnp.sqrt(var + 1e-5)
    return jnp.where(y >= 0, y, 0.2 * y)


if __name__ == "__main__":
    B, Cin, Cout, H, W = 2, 4, 8, 16, 16

    key = jax.random.PRNGKey(0)
    kx, kw, kb = jax.random.split(key, 3)
    x = jax.random.normal(kx, (B, Cin, H, W), dtype=jnp.float32)
    weight = 0.1 * jax.random.normal(kw, (Cout, Cin, 3, 3), dtype=jnp.float32)
    bias = 0.1 * jax.random.normal(kb, (Cout,), dtype=jnp.float32)

    fwd = jax.jit(full_down_block)
    out = jax.block_until_ready(fwd(x, weight, bias))

    expected = ref_forward(x, weight, bias)
    assert out.shape == (B, Cout, H // 2, W // 2), out.shape
    # Reference is full f32; the kernel uses bf16 MXU operands with f32 accumulation,
    # so allow a bf16-level tolerance (InstanceNorm's rsqrt can amplify relative error
    # on near-zero-variance channels).
    np.testing.assert_allclose(np.asarray(out), np.asarray(expected),
                               rtol=3e-2, atol=3e-2)
    print("KERNEL_OK")
</pallas_src>

<mosaic_0001>
module attributes {stable_mosaic.version = 11 : i64} {
  func.func @_down_block_kernel(%arg0: i32, %arg1: memref<1x16x128xbf16, #tpu.memory_space<vmem>>, %arg2: memref<9x8x16xbf16, #tpu.memory_space<vmem>>, %arg3: memref<1x1x80xf32, #tpu.memory_space<vmem>>, %arg4: memref<1x8x80xf32, #tpu.memory_space<vmem>>) attributes {dimension_semantics = [#tpu.dimension_semantics<parallel>], iteration_bounds = array<i64: 2>, scalar_prefetch = 0 : i64, scratch_operands = 0 : i64, tpu.core_type = #tpu.core_type<tc>, window_params = [{transform_indices = @transform_0, window_bounds = array<i64: 1, 16, 128>}, {pipeline_mode = #tpu.pipeline_mode<synchronous>, transform_indices = @transform_1, window_bounds = array<i64: 9, 8, 16>}, {pipeline_mode = #tpu.pipeline_mode<synchronous>, transform_indices = @transform_2, window_bounds = array<i64: 1, 1, 80>}, {transform_indices = @transform_3, window_bounds = array<i64: 1, 8, 80>}]} {
    %c0 = arith.constant 0 : index
    %c0_0 = arith.constant 0 : index
    %c0_1 = arith.constant 0 : index
    %0 = vector.load %arg3[%c0, %c0_0, %c0_1] : memref<1x1x80xf32, #tpu.memory_space<vmem>>, vector<1x1x80xf32>
    %1 = vector.shape_cast %0 : vector<1x1x80xf32> to vector<1x80xf32>
    %cst = arith.constant 0.000000e+00 : f32
    %2 = vector.broadcast %cst : f32 to vector<8x80xf32>
    %c0_2 = arith.constant 0 : index
    %c0_3 = arith.constant 0 : index
    %c0_4 = arith.constant 0 : index
    %3 = vector.load %arg1[%c0_2, %c0_3, %c0_4] : memref<1x16x128xbf16, #tpu.memory_space<vmem>>, vector<1x16x80xbf16>
    %4 = vector.shape_cast %3 : vector<1x16x80xbf16> to vector<16x80xbf16>
    %c0_5 = arith.constant 0 : index
    %c0_6 = arith.constant 0 : index
    %c0_7 = arith.constant 0 : index
    %5 = vector.load %arg2[%c0_5, %c0_6, %c0_7] : memref<9x8x16xbf16, #tpu.memory_space<vmem>>, vector<1x8x16xbf16>
    %6 = vector.shape_cast %5 : vector<1x8x16xbf16> to vector<8x16xbf16>
    %cst_8 = arith.constant dense<0.000000e+00> : vector<8x80xf32>
    %7 = tpu.matmul %6, %4, %cst_8 {dimension_numbers = #tpu.dot_dimension_numbers<[1], [0], [0], [1], [0, 0, 1, 1], [], []>} : vector<8x16xbf16>, vector<16x80xbf16>, vector<8x80xf32> -> vector<8x80xf32>
    %8 = arith.addf %2, %7 : vector<8x80xf32>
    %c0_9 = arith.constant 0 : index
    %c0_10 = arith.constant 0 : index
    %c1 = arith.constant 1 : index
    %9 = vector.load %arg1[%c0_9, %c0_10, %c1] : memref<1x16x128xbf16, #tpu.memory_space<vmem>>, vector<1x16x80xbf16>
    %10 = vector.shape_cast %9 : vector<1x16x80xbf16> to vector<16x80xbf16>
    %c1_11 = arith.constant 1 : index
    %c0_12 = arith.constant 0 : index
    %c0_13 = arith.constant 0 : index
    %11 = vector.load %arg2[%c1_11, %c0_12, %c0_13] : memref<9x8x16xbf16, #tpu.memory_space<vmem>>, vector<1x8x16xbf16>
    %12 = vector.shape_cast %11 : vector<1x8x16xbf16> to vector<8x16xbf16>
    %cst_14 = arith.constant dense<0.000000e+00> : vector<8x80xf32>
    %13 = tpu.matmul %12, %10, %cst_14 {dimension_numbers = #tpu.dot_dimension_numbers<[1], [0], [0], [1], [0, 0, 1, 1], [], []>} : vector<8x16xbf16>, vector<16x80xbf16>, vector<8x80xf32> -> vector<8x80xf32>
    %14 = arith.addf %8, %13 : vector<8x80xf32>
    %c0_15 = arith.constant 0 : index
    %c0_16 = arith.constant 0 : index
    %c2 = arith.constant 2 : index
    %15 = vector.load %arg1[%c0_15, %c0_16, %c2] : memref<1x16x128xbf16, #tpu.memory_space<vmem>>, vector<1x16x80xbf16>
    %16 = vector.shape_cast %15 : vector<1x16x80xbf16> to vector<16x80xbf16>
    %c2_17 = arith.constant 2 : index
    %c0_18 = arith.constant 0 : index
    %c0_19 = arith.constant 0 : index
    %17 = vector.load %arg2[%c2_17, %c0_18, %c0_19] : memref<9x8x16xbf16, #tpu.memory_space<vmem>>, vector<1x8x16xbf16>
    %18 = vector.shape_cast %17 : vector<1x8x16xbf16> to vector<8x16xbf16>
    %cst_20 = arith.constant dense<0.000000e+00> : vector<8x80xf32>
    %19 = tpu.matmul %18, %16, %cst_20 {dimension_numbers = #tpu.dot_dimension_numbers<[1], [0], [0], [1], [0, 0, 1, 1], [], []>} : vector<8x16xbf16>, vector<16x80xbf16>, vector<8x80xf32> -> vector<8x80xf32>
    %20 = arith.addf %14, %19 : vector<8x80xf32>
    %c0_21 = arith.constant 0 : index
    %c0_22 = arith.constant 0 : index
    %c10 = arith.constant 10 : index
    %21 = vector.load %arg1[%c0_21, %c0_22, %c10] : memref<1x16x128xbf16, #tpu.memory_space<vmem>>, vector<1x16x80xbf16>
    %22 = vector.shape_cast %21 : vector<1x16x80xbf16> to vector<16x80xbf16>
    %c3 = arith.constant 3 : index
    %c0_23 = arith.constant 0 : index
    %c0_24 = arith.constant 0 : index
    %23 = vector.load %arg2[%c3, %c0_23, %c0_24] : memref<9x8x16xbf16, #tpu.memory_space<vmem>>, vector<1x8x16xbf16>
    %24 = vector.shape_cast %23 : vector<1x8x16xbf16> to vector<8x16xbf16>
    %cst_25 = arith.constant dense<0.000000e+00> : vector<8x80xf32>
    %25 = tpu.matmul %24, %22, %cst_25 {dimension_numbers = #tpu.dot_dimension_numbers<[1], [0], [0], [1], [0, 0, 1, 1], [], []>} : vector<8x16xbf16>, vector<16x80xbf16>, vector<8x80xf32> -> vector<8x80xf32>
    %26 = arith.addf %20, %25 : vector<8x80xf32>
    %c0_26 = arith.constant 0 : index
    %c0_27 = arith.constant 0 : index
    %c11 = arith.constant 11 : index
    %27 = vector.load %arg1[%c0_26, %c0_27, %c11] : memref<1x16x128xbf16, #tpu.memory_space<vmem>>, vector<1x16x80xbf16>
    %28 = vector.shape_cast %27 : vector<1x16x80xbf16> to vector<16x80xbf16>
    %c4 = arith.constant 4 : index
    %c0_28 = arith.constant 0 : index
    %c0_29 = arith.constant 0 : index
    %29 = vector.load %arg2[%c4, %c0_28, %c0_29] : memref<9x8x16xbf16, #tpu.memory_space<vmem>>, vector<1x8x16xbf16>
    %30 = vector.shape_cast %29 : vector<1x8x16xbf16> to vector<8x16xbf16>
    %cst_30 = arith.constant dense<0.000000e+00> : vector<8x80xf32>
    %31 = tpu.matmul %30, %28, %cst_30 {dimension_numbers = #tpu.dot_dimension_numbers<[1], [0], [0], [1], [0, 0, 1, 1], [], []>} : vector<8x16xbf16>, vector<16x80xbf16>, vector<8x80xf32> -> vector<8x80xf32>
    %32 = arith.addf %26, %31 : vector<8x80xf32>
    %c0_31 = arith.constant 0 : index
    %c0_32 = arith.constant 0 : index
    %c12 = arith.constant 12 : index
    %33 = vector.load %arg1[%c0_31, %c0_32, %c12] : memref<1x16x128xbf16, #tpu.memory_space<vmem>>, vector<1x16x80xbf16>
    %34 = vector.shape_cast %33 : vector<1x16x80xbf16> to vector<16x80xbf16>
    %c5 = arith.constant 5 : index
    %c0_33 = arith.constant 0 : index
    %c0_34 = arith.constant 0 : index
    %35 = vector.load %arg2[%c5, %c0_33, %c0_34] : memref<9x8x16xbf16, #tpu.memory_space<vmem>>, vector<1x8x16xbf16>
    %36 = vector.shape_cast %35 : vector<1x8x16xbf16> to vector<8x16xbf16>
    %cst_35 = arith.constant dense<0.000000e+00> : vector<8x80xf32>
    %37 = tpu.matmul %36, %34, %cst_35 {dimension_numbers = #tpu.dot_dimension_numbers<[1], [0], [0], [1], [0, 0, 1, 1], [], []>} : vector<8x16xbf16>, vector<16x80xbf16>, vector<8x80xf32> -> vector<8x80xf32>
    %38 = arith.addf %32, %37 : vector<8x80xf32>
    %c0_36 = arith.constant 0 : index
    %c0_37 = arith.constant 0 : index
    %c20 = arith.constant 20 : index
    %39 = vector.load %arg1[%c0_36, %c0_37, %c20] : memref<1x16x128xbf16, #tpu.memory_space<vmem>>, vector<1x16x80xbf16>
    %40 = vector.shape_cast %39 : vector<1x16x80xbf16> to vector<16x80xbf16>
    %c6 = arith.constant 6 : index
    %c0_38 = arith.constant 0 : index
    %c0_39 = arith.constant 0 : index
    %41 = vector.load %arg2[%c6, %c0_38, %c0_39] : memref<9x8x16xbf16, #tpu.memory_space<vmem>>, vector<1x8x16xbf16>
    %42 = vector.shape_cast %41 : vector<1x8x16xbf16> to vector<8x16xbf16>
    %cst_40 = arith.constant dense<0.000000e+00> : vector<8x80xf32>
    %43 = tpu.matmul %42, %40, %cst_40 {dimension_numbers = #tpu.dot_dimension_numbers<[1], [0], [0], [1], [0, 0, 1, 1], [], []>} : vector<8x16xbf16>, vector<16x80xbf16>, vector<8x80xf32> -> vector<8x80xf32>
    %44 = arith.addf %38, %43 : vector<8x80xf32>
    %c0_41 = arith.constant 0 : index
    %c0_42 = arith.constant 0 : index
    %c21 = arith.constant 21 : index
    %45 = vector.load %arg1[%c0_41, %c0_42, %c21] : memref<1x16x128xbf16, #tpu.memory_space<vmem>>, vector<1x16x80xbf16>
    %46 = vector.shape_cast %45 : vector<1x16x80xbf16> to vector<16x80xbf16>
    %c7 = arith.constant 7 : index
    %c0_43 = arith.constant 0 : index
    %c0_44 = arith.constant 0 : index
    %47 = vector.load %arg2[%c7, %c0_43, %c0_44] : memref<9x8x16xbf16, #tpu.memory_space<vmem>>, vector<1x8x16xbf16>
    %48 = vector.shape_cast %47 : vector<1x8x16xbf16> to vector<8x16xbf16>
    %cst_45 = arith.constant dense<0.000000e+00> : vector<8x80xf32>
    %49 = tpu.matmul %48, %46, %cst_45 {dimension_numbers = #tpu.dot_dimension_numbers<[1], [0], [0], [1], [0, 0, 1, 1], [], []>} : vector<8x16xbf16>, vector<16x80xbf16>, vector<8x80xf32> -> vector<8x80xf32>
    %50 = arith.addf %44, %49 : vector<8x80xf32>
    %c0_46 = arith.constant 0 : index
    %c0_47 = arith.constant 0 : index
    %c22 = arith.constant 22 : index
    %51 = vector.load %arg1[%c0_46, %c0_47, %c22] : memref<1x16x128xbf16, #tpu.memory_space<vmem>>, vector<1x16x80xbf16>
    %52 = vector.shape_cast %51 : vector<1x16x80xbf16> to vector<16x80xbf16>
    %c8 = arith.constant 8 : index
    %c0_48 = arith.constant 0 : index
    %c0_49 = arith.constant 0 : index
    %53 = vector.load %arg2[%c8, %c0_48, %c0_49] : memref<9x8x16xbf16, #tpu.memory_space<vmem>>, vector<1x8x16xbf16>
    %54 = vector.shape_cast %53 : vector<1x8x16xbf16> to vector<8x16xbf16>
    %cst_50 = arith.constant dense<0.000000e+00> : vector<8x80xf32>
    %55 = tpu.matmul %54, %52, %cst_50 {dimension_numbers = #tpu.dot_dimension_numbers<[1], [0], [0], [1], [0, 0, 1, 1], [], []>} : vector<8x16xbf16>, vector<16x80xbf16>, vector<8x80xf32> -> vector<8x80xf32>
    %56 = arith.addf %50, %55 : vector<8x80xf32>
    %57 = vector.broadcast %1 : vector<1x80xf32> to vector<8x80xf32>
    %58 = arith.mulf %56, %57 : vector<8x80xf32>
    %cst_51 = arith.constant dense<0.000000e+00> : vector<8xf32>
    %59 = vector.multi_reduction <add>, %58, %cst_51 [1] : vector<8x80xf32> to vector<8xf32>
    %60 = vector.shape_cast %59 : vector<8xf32> to vector<8x1xf32>
    %cst_52 = arith.constant 1.562500e-02 : f32
    %61 = vector.broadcast %cst_52 : f32 to vector<8x1xf32>
    %62 = arith.mulf %60, %61 : vector<8x1xf32>
    %63 = vector.broadcast %62 : vector<8x1xf32> to vector<8x80xf32>
    %64 = arith.subf %56, %63 : vector<8x80xf32>
    %65 = arith.mulf %64, %64 : vector<8x80xf32>
    %66 = vector.broadcast %1 : vector<1x80xf32> to vector<8x80xf32>
    %67 = arith.mulf %65, %66 : vector<8x80xf32>
    %cst_53 = arith.constant dense<0.000000e+00> : vector<8xf32>
    %68 = vector.multi_reduction <add>, %67, %cst_53 [1] : vector<8x80xf32> to vector<8xf32>
    %69 = vector.shape_cast %68 : vector<8xf32> to vector<8x1xf32>
    %cst_54 = arith.constant 1.562500e-02 : f32
    %70 = vector.broadcast %cst_54 : f32 to vector<8x1xf32>
    %71 = arith.mulf %69, %70 : vector<8x1xf32>
    %cst_55 = arith.constant 9.99999974E-6 : f32
    %72 = vector.broadcast %cst_55 : f32 to vector<8x1xf32>
    %73 = arith.addf %71, %72 : vector<8x1xf32>
    %74 = math.rsqrt %73 : vector<8x1xf32>
    %75 = vector.broadcast %74 : vector<8x1xf32> to vector<8x80xf32>
    %76 = arith.mulf %64, %75 : vector<8x80xf32>
    %cst_56 = arith.constant 0.000000e+00 : f32
    %77 = vector.broadcast %cst_56 : f32 to vector<8x80xf32>
    %78 = arith.cmpf oge, %76, %77 : vector<8x80xf32>
    %cst_57 = arith.constant 2.000000e-01 : f32
    %79 = vector.broadcast %cst_57 : f32 to vector<8x80xf32>
    %80 = arith.mulf %79, %76 : vector<8x80xf32>
    %81 = arith.select %78, %76, %80 : vector<8x80xi1>, vector<8x80xf32>
    %c0_58 = arith.constant 0 : index
    %c0_59 = arith.constant 0 : index
    %c0_60 = arith.constant 0 : index
    %82 = vector.load %arg4[%c0_58, %c0_59, %c0_60] : memref<1x8x80xf32, #tpu.memory_space<vmem>>, vector<1x8x80xf32>
    %83 = vector.shape_cast %82 : vector<1x8x80xf32> to vector<8x80xf32>
    %84 = vector.shape_cast %81 : vector<8x80xf32> to vector<1x8x80xf32>
    tpu.vector_store %arg4[%c0_58, %c0_59, %c0_60], %84 {strides = array<i32>} : memref<1x8x80xf32, #tpu.memory_space<vmem>>, vector<1x8x80xf32>,
    return
  }
  func.func @transform_0(%arg0: i32) -> (i32, i32, i32) {
    %c0_i32 = arith.constant 0 : i32
    %c0_i32_0 = arith.constant 0 : i32
    %c0_i32_1 = arith.constant 0 : i32
    return %arg0, %c0_i32, %c0_i32_0 : i32, i32, i32
  }
  func.func @transform_1(%arg0: i32) -> (i32, i32, i32) {
    %c0_i32 = arith.constant 0 : i32
    %c0_i32_0 = arith.constant 0 : i32
    %c0_i32_1 = arith.constant 0 : i32
    %c0_i32_2 = arith.constant 0 : i32
    return %c0_i32, %c0_i32_0, %c0_i32_1 : i32, i32, i32
  }
  func.func @transform_2(%arg0: i32) -> (i32, i32, i32) {
    %c0_i32 = arith.constant 0 : i32
    %c0_i32_0 = arith.constant 0 : i32
    %c0_i32_1 = arith.constant 0 : i32
    %c0_i32_2 = arith.constant 0 : i32
    return %c0_i32, %c0_i32_0, %c0_i32_1 : i32, i32, i32
  }
  func.func @transform_3(%arg0: i32) -> (i32, i32, i32) {
    %c0_i32 = arith.constant 0 : i32
    %c0_i32_0 = arith.constant 0 : i32
    %c0_i32_1 = arith.constant 0 : i32
    return %arg0, %c0_i32, %c0_i32_0 : i32, i32, i32
  }
}

</mosaic_0001>

<bundles_post_ra>
// kernel: full_down_block.1
= control target key start
LH: loop header
LB: loop body
LE: loop exit
PB: predicated region body
PF: predicated region fallthrough
CT: control target
= control target key end

     0   :  { %s545_s12 = smov 0   ;;  %s611_s0 = inlined_call_operand.vmem [shape: bf16[2,16,128], index: 0, kind: input, shape index: {}]   ;;  %s612_s1 = inlined_call_operand.vmem [shape: bf16[9,8,16], index: 1, kind: input, shape index: {}]   ;;  %s613_s2 = inlined_call_operand.vmem [shape: f32[1,1,80], index: 2, kind: input, shape index: {}]   ;;  %s614_s3 = inlined_call_operand.vmem [shape: f32[2,8,80], index: 3, kind: output, shape index: {}]  }
   0x1 LB: > { %s457_s13 = sadd.s32 4294967295, %s515_s12   ;;  %p461_p0 = scmp.ge.s32.totalorder %s515_s12, 1  ;;  %s515_s12 = sphi %s545_s12, %s13_s12  }
   0x2   : > { %p137_p1 = scmp.lt.s32.totalorder %s515_s12, 3 }
   0x4   : > { %p138_p2 = pnand %p461_p0, %p137_p1 }
   0x5   : > { %p160_p3 = scmp.lt.s32.totalorder (!%p138_p2), %s457_s13, 1  ;;  %s517_s18 = smov (!%p138_p2), 118  }
   0x6   : > { %141 = sbr.rel (%p138_p2) target bundleno = 567 (0x237), region = 32  ;;  %s518_s19 = smov (!%p138_p2), 127  }
   0x7   : > { %s519_s20 = smov (!%p138_p2), 108   ;;  %s520_s21 = smov (!%p138_p2), 117  }
   0x8   : > { %s521_s22 = smov (!%p138_p2), 126   ;;  %s522_s23 = smov (!%p138_p2), 107  }
   0x9   : > { %s523_s24 = smov (!%p138_p2), 116   ;;  %s524_s25 = smov (!%p138_p2), 106  }
   0xb   : > { %s616_s13 = smov (!%p160_p3, %s457_s13), 1  ;;  %vm184_vm0 = vcmask 130048   ;;  %v173_v1 = vld [vmem:[%s612_s1] sm:$0xf]  ;;  %v465_v6 = vld [vmem:[%s612_s1 + $0x4] sm:$0xf] }
   0xc   : > { %s488_s14 = sshll.u32 %s616_s13, 3  ;;  %v474_v7 = vld [vmem:[%s612_s1 + $0xc] sm:$0xf]  ;;  %v472_v10 = vld [vmem:[%s612_s1 + $0x8] sm:$0xf]  ;;  %vm376_vm1 = vcmask 654336  }
   0xd   : > { %s164_s17 = scalar_lea.vmem %s611_s0, %s488_s14  ;;  %v476_v13 = vld [vmem:[%s612_s1 + $0x10] sm:$0xf]  ;;  %v478_v14 = vld [vmem:[%s612_s1 + $0x14] sm:$0xf]  ;;  %v482_v15 = vld [vmem:[%s612_s1 + $0x1c] sm:$0xf] }
   0xe   : > { %v489_v0 = vld [vmem:[%s164_s17] sm:$0xff]  ;;  %v480_v16 = vld [vmem:[%s612_s1 + $0x18] sm:$0xf] }
   0xf   : > { %242 = vrot.lane.b32.xlu1 %v489_v0, %s517_s18  ;;  %181 = vrot.lane.b32.xlu0 %v489_v0, %s518_s19  ;;  %v484_v17 = vld [vmem:[%s612_s1 + $0x20] sm:$0xf] }
  0x10   : > { %308 = vrot.lane.b32.xlu2 %v489_v0, %s519_s20  ;;  %212 = vmatpush.bf16.msra.mxu1 %v489_v0  ;;  %v506_v41 = vld [vmem:[%s613_s2] ss:$0 sm:$0xff] }
  0x13   : > { %471 = vmatmul.msk.bf16.vlgmr.msra.gmra.mxu1 %vm184_vm0, %v173_v1 }
  0x17   : > { %264 = vrot.lane.b32.xlu1 %v489_v0, %s520_s21  ;;  %220 = vrot.lane.b32.xlu0 %v489_v0, %s521_s22 }
  0x18   : > { %330 = vrot.lane.b32.xlu2 %v489_v0, %s522_s23 }
  0x1f   : > { %286 = vrot.lane.b32.xlu0 %v489_v0, %s523_s24  ;;  %352 = vrot.lane.b32.xlu1 %v489_v0, %s524_s25  ;;  %s168_s24 = scalar_lea.vmem %s614_s3, %s488_s14 }
  0x6a   : > { %v309_v2 = vpop.permute.xlu2 %308 }
  0x72   : > { %v331_v3 = vpop.permute.xlu2 %330 }
  0x81   : > { %v243_v4 = vpop.permute.xlu1 %242  ;;  %v182_v5 = vpop.permute.xlu0 %181 }
  0x82   : > { %195 = vmatpush.bf16.msra.mxu0 %v182_v5  ;;  %255 = vmatpush.bf16.msra.mxu3 %v243_v4 }
  0x85   : > { %470 = vmatmul.msk.bf16.vlgmr.msra.gmra.mxu0 %vm184_vm0, %v465_v6  ;;  %475 = vmatmul.msk.bf16.vlgmr.msra.gmra.mxu3 %vm184_vm0, %v474_v7 }
  0x86   : > { %343 = vmatpush.bf16.msrb.mxu3 %v331_v3 }
  0x89   : > { %v265_v8 = vpop.permute.xlu1 %264  ;;  %v221_v9 = vpop.permute.xlu0 %220 }
  0x8a   : > { %233 = vmatpush.bf16.msra.mxu2 %v221_v9  ;;  %277 = vmatpush.bf16.msrb.mxu0 %v265_v8 }
  0x8d   : > { %473 = vmatmul.msk.bf16.vlgmr.msra.gmra.mxu2 %vm184_vm0, %v472_v10 }
  0x8e   : > { %321 = vmatpush.bf16.msrb.mxu2 %v309_v2 }
  0x90   : > { %v214_v18 = vpop.f32.mrf.mxu1 }
  0x91   : > { %v287_v11 = vpop.permute.xlu0 %286  ;;  %v353_v12 = vpop.permute.xlu1 %352 }
  0x92   : > { %299 = vmatpush.bf16.msrb.mxu1 %v287_v11  ;;  %365 = vmatpush.bf16.msra.mxu0 %v353_v12 }
  0x95   : > { %477 = vmatmul.msk.bf16.vlgmr.msrb.gmra.mxu0 %vm184_vm0, %v476_v13  ;;  %479 = vmatmul.msk.bf16.vlgmr.msrb.gmra.mxu1 %vm184_vm0, %v478_v14 }
  0x96   : > { %483 = vmatmul.msk.bf16.vlgmr.msrb.gmra.mxu3 %vm184_vm0, %v482_v15 }
  0x98   : > { %v216_v19 = vpop.f32.mrf.mxu1 }
  0x9d   : > { %481 = vmatmul.msk.bf16.vlgmr.msrb.gmra.mxu2 %vm184_vm0, %v480_v16 }
  0xa5   : > { %485 = vmatmul.msk.bf16.vlgmr.msra.gmra.mxu0 %vm184_vm0, %v484_v17 }
 0x102   : > { %v197_v20 = vpop.f32.mrf.mxu0 }
 0x103   : > { %v215_v25 = vadd.f32 %v214_v18, %v197_v20 }
 0x108   : > { %v257_v21 = vpop.f32.mrf.mxu3 }
 0x10a   : > { %v199_v22 = vpop.f32.mrf.mxu0 }
 0x110   : > { %v235_v23 = vpop.f32.mrf.mxu2  ;;  %v259_v24 = vpop.f32.mrf.mxu3 }
 0x111   : > { %v239_v28 = vadd.f32 %v235_v23, %v215_v25 }
 0x112   : > { %v279_v26 = vpop.f32.mrf.mxu0  ;;  %v301_v27 = vpop.f32.mrf.mxu1 }
 0x113   : > { %v261_v29 = vadd.f32 %v257_v21, %v239_v28 }
 0x115   : > { %v283_v34 = vadd.f32 %v279_v26, %v261_v29 }
 0x117   : > { %v305_v35 = vadd.f32 %v301_v27, %v283_v34 }
 0x118   : > { %v237_v30 = vpop.f32.mrf.mxu2 }
 0x119   : > { %v345_v31 = vpop.f32.mrf.mxu3 }
 0x11a   : > { %v281_v32 = vpop.f32.mrf.mxu0  ;;  %v303_v33 = vpop.f32.mrf.mxu1 }
 0x120   : > { %v323_v36 = vpop.f32.mrf.mxu2 }
 0x121   : > { %v327_v37 = vadd.f32 %v323_v36, %v305_v35  ;;  %v347_v38 = vpop.f32.mrf.mxu3 }
 0x122   : > { %v367_v39 = vpop.f32.mrf.mxu0 }
 0x123   : > { %v349_v40 = vadd.f32 %v345_v31, %v327_v37 }
 0x125   : > { %v371_v42 = vadd.f32 %v367_v39, %v349_v40 }
 0x127   : > { %v375_v43 = vmul.f32 %v506_v41, %v371_v42 }
 0x128   : > { %v325_v44 = vpop.f32.mrf.mxu2 }
 0x129   : > { %v377_v45 = vsel %vm376_vm1, %v375_v43, 0.0 }
 0x12a   : > { %v369_v46 = vpop.f32.mrf.mxu0  ;;  %378 = vadd.xlane.f32.xlu2 %v377_v45 }
 0x19d   : > { %v379_v47 = vpop.xlane.xlu2 %378 }
 0x19e   : > { %v380_v48 = vmul.f32 0.015625, %v379_v47 }
 0x1a0   : > { %v381_v49 = vsub.f32 %v371_v42, %v380_v48 }
 0x1a2   : > { %v382_v50 = vmul.f32 %v381_v49, %v381_v49 }
 0x1a4   : > { %v383_v51 = vmul.f32 %v506_v41, %v382_v50 }
 0x1a6   : > { %v384_v52 = vsel %vm376_vm1, %v383_v51, 0.0 }
 0x1a7   : > { %385 = vadd.xlane.f32.xlu0 %v384_v52 }
 0x21a   : > { %v386_v53 = vpop.xlane.xlu0 %385 }
 0x21b   : > { %v387_v54 = vmul.f32 0.015625, %v386_v53 }
 0x21d   : > { %v388_v55 = vadd.f32 1e-05, %v387_v54 }
 0x21f   : > { %507 = vrsqrt.f32 %v388_v55  ;;  %vm395_vm3 = vweird.f32 %v388_v55 }
 0x225   : > { %v508_v56 = vpop.eup %507 }
 0x226   : > { %v390_v57 = vmul.f32 %v508_v56, %v388_v55  ;;  %vm396_vm2 = vweird.f32 %v508_v56 }
 0x227   : > { %vm397_vm4 = vmor %vm395_vm3, %vm396_vm2 }
 0x228   : > { %v391_v58 = vmul.f32 %v508_v56, %v390_v57 }
 0x22a   : > { %v392_v59 = vmul.f32 0.5, %v391_v58 }
 0x22c   : > { %v393_v60 = vsub.f32 1.5, %v392_v59 }
 0x22e   : > { %v394_v61 = vmul.f32 %v508_v56, %v393_v60 }
 0x230   : > { %v398_v62 = vsel %vm397_vm4, %v508_v56, %v394_v61 }
 0x231   : > { %v399_v63 = vmul.f32 %v398_v62, %v381_v49 }
 0x233   : > { %vm400_vm5 = vcmp.ge.f32.partialorder %v399_v63, 0.0  ;;  %v401_v0 = vmul.f32 0.2, %v399_v63 }
 0x235   : > { %v402_v1 = vsel %vm400_vm5, %v399_v63, %v401_v0 }
 0x236   : > { %403 = vst.msk [vmem:[%s168_s24] sm:$0xff] %vm376_vm1, %v402_v1 }
 0x237 PF: > { %s13_s12 = sadd.s32 1, %s515_s12  }
 0x238   : > { %p10_p4 = scmp.ge.s32.totalorder %s13_s12, 4  }
 0x23a   :  { %12 = sbr.rel (!%p10_p4) target bundleno = 1 (0x1), region = 70 }

</bundles_post_ra>
